<compile_context>
chip_gen: v6e
topology: v6e:2x2x1
jax: 0.10.0
libtpu: 0.0.40
codegen_flags: <defaults>
</compile_context>

<pallas_src>
import functools
import math

import jax
import jax.numpy as jnp
from jax import lax
from jax.experimental import pallas as pl
from jax.experimental.pallas import tpu as pltpu


def _nt_xent_kernel(zt_ref, zrow_ref, zpar_ref, out_ref, denom_ref, *, inv_t):
    """One (row-tile, column-tile) step of the NT-Xent loss.

    zt_ref   : (D, TC)  pre-normalized embeddings, transposed (MXU RHS).
    zrow_ref : (TR, D)  pre-normalized embeddings for this tile's rows (MXU LHS).
    zpar_ref : (TR, D)  pre-normalized embeddings of each row's positive partner.
    out_ref  : (1, TR)  per-row losses, written on the last column tile (lane-dense).
    denom_ref: (TR, 1)  f32 scratch accumulating sum_k exp(sim[r, k] / T).
    """
    j = pl.program_id(1)

    @pl.when(j == 0)
    def _init():
        denom_ref[...] = jnp.zeros_like(denom_ref)

    # MXU: (TR, D) @ (D, TC) -> (TR, TC), f32 accumulation.
    sim = jnp.dot(zrow_ref[...], zt_ref[...], preferred_element_type=jnp.float32)
    # EUP exp + lane reduction; 1/T is applied to the exact f32 product.
    denom_ref[...] += jnp.sum(jnp.exp(sim * inv_t), axis=1, keepdims=True)

    @pl.when(j == pl.num_programs(1) - 1)
    def _finalize():
        zr = zrow_ref[...].astype(jnp.float32)
        zp = zpar_ref[...].astype(jnp.float32)
        # Positive-pair similarity and the row's own diagonal term.  The diag is
        # recomputed per row in f32 from the same (possibly bf16-rounded) values
        # the MXU saw, so subtracting it cancels the self term without bias.
        pos_over_t = jnp.sum(zr * zp, axis=1, keepdims=True) * inv_t          # (TR, 1)
        self_term = jnp.exp(jnp.sum(zr * zr, axis=1, keepdims=True) * inv_t)  # (TR, 1)
        denom = denom_ref[...] - self_term
        # -log(exp(pos/T) / denom) == log(denom) - pos/T
        loss_col = jnp.log(denom) - pos_over_t                                # (TR, 1)
        out_ref[...] = jnp.transpose(loss_col)         # lane-dense (1, TR) store


def _pick_tile(n, candidates):
    for c in candidates:
        if c <= n and n % c == 0:
            return c
    return n  # tiny / odd sizes: one full-extent tile


def _build_call(*, n_row_tiles, n_col_tiles, tr, tc, d_pad, n2, inv_t,
                vmem_limit, single_buffer_zt):
    zt_kwargs = {}
    if single_buffer_zt:
        # The z^T block index never changes, so double-buffering it only wastes a
        # full extra (D, 2B) buffer of VMEM.
        zt_kwargs["pipeline_mode"] = pl.Buffered(1)
    kernel = functools.partial(_nt_xent_kernel, inv_t=inv_t)
    return pl.pallas_call(
        kernel,
        out_shape=jax.ShapeDtypeStruct((1, n2), jnp.float32),
        grid=(n_row_tiles, n_col_tiles),
        in_specs=[
            pl.BlockSpec((d_pad, tc), lambda i, j: (0, j), **zt_kwargs),  # z^T columns
            pl.BlockSpec((tr, d_pad), lambda i, j: (i, 0)),               # row tile
            pl.BlockSpec((tr, d_pad), lambda i, j: (i, 0)),               # positive partners
        ],
        out_specs=pl.BlockSpec((1, tr), lambda i, j: (0, i)),
        scratch_shapes=[pltpu.VMEM((tr, 1), jnp.float32)],
        compiler_params=pltpu.CompilerParams(
            dimension_semantics=("parallel", "arbitrary"),  # rows split across cores
            vmem_limit_bytes=vmem_limit,
        ),
    )


def contrastive_loss(proj_1, proj_2, *, temperature=0.5, mxu_dtype=jnp.bfloat16):
    """NT-Xent loss matching ContrastiveLoss.forward.

    Assumes the PyTorch module's constructor batch_size equals the runtime batch
    (the reference divides by 2 * self.batch_size).
    """
    batch_size, dim = proj_1.shape
    n2 = 2 * batch_size
    inv_t = 1.0 / float(temperature)

    # No running max is used in the exp row-sum (sim <= 1 for unit-norm rows), so
    # the per-row denominator sum_k exp(sim/T) <= 2B * exp(1/T) must stay finite
    # in f32.
    if inv_t + math.log(n2) > 85.0:
        raise ValueError(
            f"temperature={temperature} is too small for the no-running-max "
            "denominator; use a running-max (flash-softmax) variant instead.")

    # ---- wrapper-side (XLA) preprocessing: normalize ONCE, concat, pad, transpose.
    def l2norm(x):
        # F.normalize(p=2): x / max(||x||, 1e-12)  ==  x * rsqrt(max(||x||^2, 1e-24))
        x = x.astype(jnp.float32)
        ss = jnp.sum(x * x, axis=1, keepdims=True)
        return x * lax.rsqrt(jnp.maximum(ss, 1e-24))

    z_i = l2norm(proj_1)
    z_j = l2norm(proj_2)
    z = jnp.concatenate([z_i, z_j], axis=0)        # (2B, D) rows
    z_par = jnp.concatenate([z_j, z_i], axis=0)    # (2B, D) positive partner of each row

    # Pad the feature dim to a multiple of 128 (zero columns don't change dots,
    # norms were computed before padding anyway).
    d_pad = ((dim + 127) // 128) * 128
    if d_pad != dim:
        pad = ((0, 0), (0, d_pad - dim))
        z = jnp.pad(z, pad)
        z_par = jnp.pad(z_par, pad)

    # Cast the MXU operands (bf16 by default); accumulation stays f32 in-kernel.
    z_c = z.astype(mxu_dtype)
    z_par_c = z_par.astype(mxu_dtype)
    z_t = jnp.transpose(z_c)                       # (D_pad, 2B)  MXU RHS

    # Row tiles sized for the 256x256 MXU; column tiles bound VMEM vs batch size.
    # TODO(synk): prefer tr=128 on v5e (4x128x128 MXU) via a chip-version switch.
    tr = _pick_tile(n2, (256, 128))
    tc = _pick_tile(n2, (2048, 1024, 512, 256, 128))
    n_row_tiles = n2 // tr
    n_col_tiles = n2 // tc

    itemsize = jnp.dtype(mxu_dtype).itemsize
    est = (2 * d_pad * tc * itemsize            # z^T window (<= 2 buffers)
           + 2 * 2 * tr * d_pad * itemsize      # row tile + partner tile, double buffered
           + 2 * tr * 4 + tr * 4                # output blocks + denominator scratch
           + 3 * tr * tc * 4)                   # sim / exp slabs + headroom
    vmem_limit = int(min(64 * 2 ** 20, max(32 * 2 ** 20, 2 * est)))

    def run(single_buffer_zt):
        call = _build_call(
            n_row_tiles=n_row_tiles, n_col_tiles=n_col_tiles, tr=tr, tc=tc,
            d_pad=d_pad, n2=n2, inv_t=inv_t, vmem_limit=vmem_limit,
            single_buffer_zt=single_buffer_zt)
        return call(z_t, z_c, z_par_c)

    if n_col_tiles == 1:
        try:
            per_row = run(single_buffer_zt=True)
        except Exception:  # pragma: no cover - jax builds w/o pipeline_mode support
            per_row = run(single_buffer_zt=False)
    else:
        per_row = run(single_buffer_zt=False)

    return jnp.sum(per_row) / (2.0 * batch_size)


def _reference_loss(proj_1, proj_2, temperature=0.5):
    """Pure-JAX reference reproducing the PyTorch module exactly (f32)."""
    batch_size = proj_1.shape[0]

    def l2norm(x):
        n = jnp.sqrt(jnp.sum(x * x, axis=1, keepdims=True))
        return x / jnp.maximum(n, 1e-12)

    z = jnp.concatenate([l2norm(proj_1), l2norm(proj_2)], axis=0)
    sim = z @ z.T
    sim_ij = jnp.diagonal(sim, offset=batch_size)
    sim_ji = jnp.diagonal(sim, offset=-batch_size)
    positives = jnp.concatenate([sim_ij, sim_ji], axis=0)
    nominator = jnp.exp(positives / temperature)
    mask = 1.0 - jnp.eye(2 * batch_size)
    denominator = jnp.sum(mask * jnp.exp(sim / temperature), axis=1)
    all_losses = -jnp.log(nominator / denominator)
    return jnp.sum(all_losses) / (2 * batch_size)


if __name__ == "__main__":
    # Small shapes consistent with forward(): batched embeddings [batch, embedding_dim].
    batch, hidden = 8, 32
    key = jax.random.PRNGKey(0)
    k1, k2 = jax.random.split(key)
    proj_1 = jax.random.normal(k1, (batch, hidden), dtype=jnp.float32)
    proj_2 = jax.random.normal(k2, (batch, hidden), dtype=jnp.float32)

    ref = jax.block_until_ready(_reference_loss(proj_1, proj_2, temperature=0.5))

    # Default fast path: bf16 MXU operands (f32 accumulate / exp / log).
    loss_bf16 = jax.block_until_ready(
        contrastive_loss(proj_1, proj_2, temperature=0.5))
    assert jnp.allclose(loss_bf16, ref, atol=3e-2, rtol=3e-2), (loss_bf16, ref)

    # Full-f32 operand path: tight check against the exact reference.
    loss_f32 = jax.block_until_ready(
        contrastive_loss(proj_1, proj_2, temperature=0.5, mxu_dtype=jnp.float32))
    assert jnp.allclose(loss_f32, ref, atol=1e-4, rtol=1e-4), (loss_f32, ref)

    print("KERNEL_OK")
</pallas_src>

<mosaic_0001>
module attributes {stable_mosaic.version = 11 : i64} {
  func.func @_nt_xent_kernel(%arg0: i32, %arg1: i32, %arg2: memref<128x16xbf16, #tpu.memory_space<vmem>>, %arg3: memref<16x128xbf16, #tpu.memory_space<vmem>>, %arg4: memref<16x128xbf16, #tpu.memory_space<vmem>>, %arg5: memref<1x16xf32, #tpu.memory_space<vmem>>, %arg6: memref<16x1xf32, #tpu.memory_space<vmem>>) attributes {dimension_semantics = [#tpu.dimension_semantics<parallel>, #tpu.dimension_semantics<arbitrary>], iteration_bounds = array<i64: 1, 1>, scalar_prefetch = 0 : i64, scratch_operands = 1 : i64, tpu.core_type = #tpu.core_type<tc>, window_params = [{pipeline_mode = #tpu.pipeline_mode<synchronous>, transform_indices = @transform_0, window_bounds = array<i64: 128, 16>}, {transform_indices = @transform_1, window_bounds = array<i64: 16, 128>}, {transform_indices = @transform_2, window_bounds = array<i64: 16, 128>}, {transform_indices = @transform_3, window_bounds = array<i64: 1, 16>}]} {
    %c0_i32 = arith.constant 0 : i32
    %0 = arith.cmpi eq, %arg1, %c0_i32 : i32
    %1 = arith.extui %0 : i1 to i32
    %c0_i32_0 = arith.constant 0 : i32
    %2 = arith.cmpi ne, %1, %c0_i32_0 : i32
    scf.if %2 {
      %cst_12 = arith.constant 0.000000e+00 : f32
      %17 = vector.broadcast %cst_12 : f32 to vector<16x1xf32>
      %c0_13 = arith.constant 0 : index
      %c0_14 = arith.constant 0 : index
      %18 = vector.load %arg6[%c0_13, %c0_14] : memref<16x1xf32, #tpu.memory_space<vmem>>, vector<16x1xf32>
      tpu.vector_store %arg6[%c0_13, %c0_14], %17 {strides = array<i32>} : memref<16x1xf32, #tpu.memory_space<vmem>>, vector<16x1xf32>,
    } else {
    }
    %c0 = arith.constant 0 : index
    %c0_1 = arith.constant 0 : index
    %3 = vector.load %arg3[%c0, %c0_1] : memref<16x128xbf16, #tpu.memory_space<vmem>>, vector<16x128xbf16>
    %c0_2 = arith.constant 0 : index
    %c0_3 = arith.constant 0 : index
    %4 = vector.load %arg2[%c0_2, %c0_3] : memref<128x16xbf16, #tpu.memory_space<vmem>>, vector<128x16xbf16>
    %cst = arith.constant dense<0.000000e+00> : vector<16x16xf32>
    %5 = tpu.matmul %3, %4, %cst {dimension_numbers = #tpu.dot_dimension_numbers<[1], [0], [0], [1], [0, 0, 1, 1], [], []>} : vector<16x128xbf16>, vector<128x16xbf16>, vector<16x16xf32> -> vector<16x16xf32>
    %c0_4 = arith.constant 0 : index
    %c0_5 = arith.constant 0 : index
    %6 = vector.load %arg6[%c0_4, %c0_5] : memref<16x1xf32, #tpu.memory_space<vmem>>, vector<16x1xf32>
    %cst_6 = arith.constant 2.000000e+00 : f32
    %7 = vector.broadcast %cst_6 : f32 to vector<16x16xf32>
    %8 = arith.mulf %5, %7 : vector<16x16xf32>
    %9 = math.exp %8 : vector<16x16xf32>
    %cst_7 = arith.constant dense<0.000000e+00> : vector<16xf32>
    %10 = vector.multi_reduction <add>, %9, %cst_7 [1] : vector<16x16xf32> to vector<16xf32>
    %11 = vector.shape_cast %10 : vector<16xf32> to vector<16x1xf32>
    %12 = arith.addf %6, %11 : vector<16x1xf32>
    %c0_8 = arith.constant 0 : index
    %c0_9 = arith.constant 0 : index
    %13 = vector.load %arg6[%c0_8, %c0_9] : memref<16x1xf32, #tpu.memory_space<vmem>>, vector<16x1xf32>
    tpu.vector_store %arg6[%c0_8, %c0_9], %12 {strides = array<i32>} : memref<16x1xf32, #tpu.memory_space<vmem>>, vector<16x1xf32>,
    %c0_i32_10 = arith.constant 0 : i32
    %14 = arith.cmpi eq, %arg1, %c0_i32_10 : i32
    %15 = arith.extui %14 : i1 to i32
    %c0_i32_11 = arith.constant 0 : i32
    %16 = arith.cmpi ne, %15, %c0_i32_11 : i32
    scf.if %16 {
      %c0_12 = arith.constant 0 : index
      %c0_13 = arith.constant 0 : index
      %17 = vector.load %arg3[%c0_12, %c0_13] : memref<16x128xbf16, #tpu.memory_space<vmem>>, vector<16x128xbf16>
      %18 = arith.extf %17 : vector<16x128xbf16> to vector<16x128xf32>
      %c0_14 = arith.constant 0 : index
      %c0_15 = arith.constant 0 : index
      %19 = vector.load %arg4[%c0_14, %c0_15] : memref<16x128xbf16, #tpu.memory_space<vmem>>, vector<16x128xbf16>
      %20 = arith.extf %19 : vector<16x128xbf16> to vector<16x128xf32>
      %21 = arith.mulf %18, %20 : vector<16x128xf32>
      %cst_16 = arith.constant dense<0.000000e+00> : vector<16xf32>
      %22 = vector.multi_reduction <add>, %21, %cst_16 [1] : vector<16x128xf32> to vector<16xf32>
      %23 = vector.shape_cast %22 : vector<16xf32> to vector<16x1xf32>
      %cst_17 = arith.constant 2.000000e+00 : f32
      %24 = vector.broadcast %cst_17 : f32 to vector<16x1xf32>
      %25 = arith.mulf %23, %24 : vector<16x1xf32>
      %26 = arith.mulf %18, %18 : vector<16x128xf32>
      %cst_18 = arith.constant dense<0.000000e+00> : vector<16xf32>
      %27 = vector.multi_reduction <add>, %26, %cst_18 [1] : vector<16x128xf32> to vector<16xf32>
      %28 = vector.shape_cast %27 : vector<16xf32> to vector<16x1xf32>
      %cst_19 = arith.constant 2.000000e+00 : f32
      %29 = vector.broadcast %cst_19 : f32 to vector<16x1xf32>
      %30 = arith.mulf %28, %29 : vector<16x1xf32>
      %31 = math.exp %30 : vector<16x1xf32>
      %c0_20 = arith.constant 0 : index
      %c0_21 = arith.constant 0 : index
      %32 = vector.load %arg6[%c0_20, %c0_21] : memref<16x1xf32, #tpu.memory_space<vmem>>, vector<16x1xf32>
      %33 = arith.subf %32, %31 : vector<16x1xf32>
      %34 = math.log %33 : vector<16x1xf32>
      %35 = arith.subf %34, %25 : vector<16x1xf32>
      %36 = tpu.transpose %35, [1, 0] : vector<16x1xf32> -> vector<1x16xf32>
      %c0_22 = arith.constant 0 : index
      %c0_23 = arith.constant 0 : index
      %37 = vector.load %arg5[%c0_22, %c0_23] : memref<1x16xf32, #tpu.memory_space<vmem>>, vector<1x16xf32>
      tpu.vector_store %arg5[%c0_22, %c0_23], %36 {strides = array<i32>} : memref<1x16xf32, #tpu.memory_space<vmem>>, vector<1x16xf32>,
    } else {
    }
    return
  }
  func.func @transform_0(%arg0: i32, %arg1: i32) -> (i32, i32) {
    %c0_i32 = arith.constant 0 : i32
    %c0_i32_0 = arith.constant 0 : i32
    return %c0_i32, %arg1 : i32, i32
  }
  func.func @transform_1(%arg0: i32, %arg1: i32) -> (i32, i32) {
    %c0_i32 = arith.constant 0 : i32
    %c0_i32_0 = arith.constant 0 : i32
    return %arg0, %c0_i32 : i32, i32
  }
  func.func @transform_2(%arg0: i32, %arg1: i32) -> (i32, i32) {
    %c0_i32 = arith.constant 0 : i32
    %c0_i32_0 = arith.constant 0 : i32
    return %arg0, %c0_i32 : i32, i32
  }
  func.func @transform_3(%arg0: i32, %arg1: i32) -> (i32, i32) {
    %c0_i32 = arith.constant 0 : i32
    %c0_i32_0 = arith.constant 0 : i32
    return %c0_i32, %arg0 : i32, i32
  }
}

module attributes {stable_mosaic.version = 11 : i64} {
  func.func @_nt_xent_kernel(%arg0: i32, %arg1: i32, %arg2: memref<128x16xbf16, #tpu.memory_space<vmem>>, %arg3: memref<16x128xbf16, #tpu.memory_space<vmem>>, %arg4: memref<16x128xbf16, #tpu.memory_space<vmem>>, %arg5: memref<1x16xf32, #tpu.memory_space<vmem>>, %arg6: memref<16x1xf32, #tpu.memory_space<vmem>>) attributes {dimension_semantics = [#tpu.dimension_semantics<parallel>, #tpu.dimension_semantics<arbitrary>], iteration_bounds = array<i64: 1, 1>, scalar_prefetch = 0 : i64, scratch_operands = 1 : i64, tpu.core_type = #tpu.core_type<tc>, window_params = [{transform_indices = @transform_0, window_bounds = array<i64: 128, 16>}, {transform_indices = @transform_1, window_bounds = array<i64: 16, 128>}, {transform_indices = @transform_2, window_bounds = array<i64: 16, 128>}, {transform_indices = @transform_3, window_bounds = array<i64: 1, 16>}]} {
    %c0_i32 = arith.constant 0 : i32
    %0 = arith.cmpi eq, %arg1, %c0_i32 : i32
    %1 = arith.extui %0 : i1 to i32
    %c0_i32_0 = arith.constant 0 : i32
    %2 = arith.cmpi ne, %1, %c0_i32_0 : i32
    scf.if %2 {
      %cst_12 = arith.constant 0.000000e+00 : f32
      %17 = vector.broadcast %cst_12 : f32 to vector<16x1xf32>
      %c0_13 = arith.constant 0 : index
      %c0_14 = arith.constant 0 : index
      %18 = vector.load %arg6[%c0_13, %c0_14] : memref<16x1xf32, #tpu.memory_space<vmem>>, vector<16x1xf32>
      tpu.vector_store %arg6[%c0_13, %c0_14], %17 {strides = array<i32>} : memref<16x1xf32, #tpu.memory_space<vmem>>, vector<16x1xf32>,
    } else {
    }
    %c0 = arith.constant 0 : index
    %c0_1 = arith.constant 0 : index
    %3 = vector.load %arg3[%c0, %c0_1] : memref<16x128xbf16, #tpu.memory_space<vmem>>, vector<16x128xbf16>
    %c0_2 = arith.constant 0 : index
    %c0_3 = arith.constant 0 : index
    %4 = vector.load %arg2[%c0_2, %c0_3] : memref<128x16xbf16, #tpu.memory_space<vmem>>, vector<128x16xbf16>
    %cst = arith.constant dense<0.000000e+00> : vector<16x16xf32>
    %5 = tpu.matmul %3, %4, %cst {dimension_numbers = #tpu.dot_dimension_numbers<[1], [0], [0], [1], [0, 0, 1, 1], [], []>} : vector<16x128xbf16>, vector<128x16xbf16>, vector<16x16xf32> -> vector<16x16xf32>
    %c0_4 = arith.constant 0 : index
    %c0_5 = arith.constant 0 : index
    %6 = vector.load %arg6[%c0_4, %c0_5] : memref<16x1xf32, #tpu.memory_space<vmem>>, vector<16x1xf32>
    %cst_6 = arith.constant 2.000000e+00 : f32
    %7 = vector.broadcast %cst_6 : f32 to vector<16x16xf32>
    %8 = arith.mulf %5, %7 : vector<16x16xf32>
    %9 = math.exp %8 : vector<16x16xf32>
    %cst_7 = arith.constant dense<0.000000e+00> : vector<16xf32>
    %10 = vector.multi_reduction <add>, %9, %cst_7 [1] : vector<16x16xf32> to vector<16xf32>
    %11 = vector.shape_cast %10 : vector<16xf32> to vector<16x1xf32>
    %12 = arith.addf %6, %11 : vector<16x1xf32>
    %c0_8 = arith.constant 0 : index
    %c0_9 = arith.constant 0 : index
    %13 = vector.load %arg6[%c0_8, %c0_9] : memref<16x1xf32, #tpu.memory_space<vmem>>, vector<16x1xf32>
    tpu.vector_store %arg6[%c0_8, %c0_9], %12 {strides = array<i32>} : memref<16x1xf32, #tpu.memory_space<vmem>>, vector<16x1xf32>,
    %c0_i32_10 = arith.constant 0 : i32
    %14 = arith.cmpi eq, %arg1, %c0_i32_10 : i32
    %15 = arith.extui %14 : i1 to i32
    %c0_i32_11 = arith.constant 0 : i32
    %16 = arith.cmpi ne, %15, %c0_i32_11 : i32
    scf.if %16 {
      %c0_12 = arith.constant 0 : index
      %c0_13 = arith.constant 0 : index
      %17 = vector.load %arg3[%c0_12, %c0_13] : memref<16x128xbf16, #tpu.memory_space<vmem>>, vector<16x128xbf16>
      %18 = arith.extf %17 : vector<16x128xbf16> to vector<16x128xf32>
      %c0_14 = arith.constant 0 : index
      %c0_15 = arith.constant 0 : index
      %19 = vector.load %arg4[%c0_14, %c0_15] : memref<16x128xbf16, #tpu.memory_space<vmem>>, vector<16x128xbf16>
      %20 = arith.extf %19 : vector<16x128xbf16> to vector<16x128xf32>
      %21 = arith.mulf %18, %20 : vector<16x128xf32>
      %cst_16 = arith.constant dense<0.000000e+00> : vector<16xf32>
      %22 = vector.multi_reduction <add>, %21, %cst_16 [1] : vector<16x128xf32> to vector<16xf32>
      %23 = vector.shape_cast %22 : vector<16xf32> to vector<16x1xf32>
      %cst_17 = arith.constant 2.000000e+00 : f32
      %24 = vector.broadcast %cst_17 : f32 to vector<16x1xf32>
      %25 = arith.mulf %23, %24 : vector<16x1xf32>
      %26 = arith.mulf %18, %18 : vector<16x128xf32>
      %cst_18 = arith.constant dense<0.000000e+00> : vector<16xf32>
      %27 = vector.multi_reduction <add>, %26, %cst_18 [1] : vector<16x128xf32> to vector<16xf32>
      %28 = vector.shape_cast %27 : vector<16xf32> to vector<16x1xf32>
      %cst_19 = arith.constant 2.000000e+00 : f32
      %29 = vector.broadcast %cst_19 : f32 to vector<16x1xf32>
      %30 = arith.mulf %28, %29 : vector<16x1xf32>
      %31 = math.exp %30 : vector<16x1xf32>
      %c0_20 = arith.constant 0 : index
      %c0_21 = arith.constant 0 : index
      %32 = vector.load %arg6[%c0_20, %c0_21] : memref<16x1xf32, #tpu.memory_space<vmem>>, vector<16x1xf32>
      %33 = arith.subf %32, %31 : vector<16x1xf32>
      %34 = math.log %33 : vector<16x1xf32>
      %35 = arith.subf %34, %25 : vector<16x1xf32>
      %36 = tpu.transpose %35, [1, 0] : vector<16x1xf32> -> vector<1x16xf32>
      %c0_22 = arith.constant 0 : index
      %c0_23 = arith.constant 0 : index
      %37 = vector.load %arg5[%c0_22, %c0_23] : memref<1x16xf32, #tpu.memory_space<vmem>>, vector<1x16xf32>
      tpu.vector_store %arg5[%c0_22, %c0_23], %36 {strides = array<i32>} : memref<1x16xf32, #tpu.memory_space<vmem>>, vector<1x16xf32>,
    } else {
    }
    return
  }
  func.func @transform_0(%arg0: i32, %arg1: i32) -> (i32, i32) {
    %c0_i32 = arith.constant 0 : i32
    %c0_i32_0 = arith.constant 0 : i32
    return %c0_i32, %arg1 : i32, i32
  }
  func.func @transform_1(%arg0: i32, %arg1: i32) -> (i32, i32) {
    %c0_i32 = arith.constant 0 : i32
    %c0_i32_0 = arith.constant 0 : i32
    return %arg0, %c0_i32 : i32, i32
  }
  func.func @transform_2(%arg0: i32, %arg1: i32) -> (i32, i32) {
    %c0_i32 = arith.constant 0 : i32
    %c0_i32_0 = arith.constant 0 : i32
    return %arg0, %c0_i32 : i32, i32
  }
  func.func @transform_3(%arg0: i32, %arg1: i32) -> (i32, i32) {
    %c0_i32 = arith.constant 0 : i32
    %c0_i32_0 = arith.constant 0 : i32
    return %c0_i32, %arg0 : i32, i32
  }
}

</mosaic_0001>

<bundles_post_ra>
// kernel: tpu_custom_call.1
= control target key start
LH: loop header
LB: loop body
LE: loop exit
PB: predicated region body
PF: predicated region fallthrough
CT: control target
= control target key end

     0   :  { %v337_v1 = vmov 0.0   ;;  %vm338_vm0 = vmmov 0   ;;  %s400_s0 = inlined_call_operand.vmem [shape: bf16[128,16], index: 0, kind: input, shape index: {}]   ;;  %s401_s1 = inlined_call_operand.vmem [shape: bf16[16,128], index: 1, kind: input, shape index: {}]   ;;  %s402_s2 = inlined_call_operand.vmem [shape: bf16[16,128], index: 2, kind: input, shape index: {}]   ;;  %s403_s3 = inlined_call_operand.hbm [shape: f32[1,16], index: 3, kind: output, shape index: {}]  }
   0x1   :  { %v294_v0 = vld [vmem:[%s400_s0 + $0x38] sm:$0xff]   ;;  %271 = vmatprep.subr.bf16.mxu0 %v337_v1  ;;  %v295_v2 = vld [vmem:[%s400_s0 + $0x30] sm:$0xff]   ;;  %287 = vmatprep.mubr.msk.bf16.mxu0 %vm338_vm0, %v337_v1  ;;  %v296_v3 = vld [vmem:[%s400_s0 + $0x28] sm:$0xff]  }
   0x2   :  { %272 = vmatpush3.bf16.msra.mxu0 %v294_v0 }
   0x3   :  { %273 = vmatprep.subr.bf16.mxu0 %v337_v1 }
   0x6   :  { %274 = vmatpush3.bf16.msra.mxu0 %v295_v2 }
   0x7   :  { %275 = vmatprep.subr.bf16.mxu0 %v337_v1 }
   0x8   :  { %8 = vsyncpa [#allocation4], 0  ;;  %v297_v4 = vld [vmem:[%s400_s0 + $0x20] sm:$0xff]   ;;  %v298_v5 = vld [vmem:[%s400_s0 + $0x18] sm:$0xff]   ;;  %vm144_vm1 = vcmask 130048   ;;  %vm20_vm2 = vcmask 7168  }
   0x9   :  { %v299_v6 = vld [vmem:[%s400_s0 + $0x10] sm:$0xff]   ;;  %v300_v7 = vld [vmem:[%s400_s0 + $0x8] sm:$0xff]   ;;  %v301_v8 = vld [vmem:[%s400_s0] sm:$0xff]   ;;  %21 = vst.msk [vmem:[#allocation2] sm:$0xff] %vm20_vm2, %v337_v1  ;;  %s339_s0 = smov [#allocation3]   ;;  %vm229_vm3 = vcmask 122880  }
   0xa   :  { %276 = vmatpush3.bf16.msra.mxu0 %v296_v3  ;;  %v302_v9 = vld [vmem:[%s401_s1] sm:$0xff]   ;;  %22 = vst.msk [vmem:[#allocation2 + $0x8] sm:$0xff] %vm20_vm2, %v337_v1 }
   0xb   :  { %277 = vmatprep.subr.bf16.mxu0 %v337_v1  ;;  %v255_v10 = vld [vmem:[%s401_s1] sm:$0xff]   ;;  %s237_s1 = sshll.u32 %s339_s0, 4  ;;  %s238_s1 = int_to_ptr.vmem [resolvable:$true] %s237_s1 }
   0xc   :  { %v256_v11 = vunpack.c.l.bf16 %v255_v10  ;;  %v257_v12 = vunpack.c.h.bf16 %v255_v10  ;;  %v259_v15 = vld [vmem:[%s402_s2] sm:$0xff]   ;;  %s315_s2 = scalar_lea.vmem %s238_s1, 16  ;;  %s319_s7 = scalar_lea.vmem %s238_s1, 32 }
   0xd   :  { %v260_v16 = vunpack.c.l.bf16 %v259_v15  ;;  %v261_v17 = vunpack.c.h.bf16 %v259_v15  ;;  %p316_p0 = scmp.ne.s32.totalorder %s238_s1, %s315_s2  ;;  %p320_p1 = scmp.lt.s32.totalorder %s238_s1, %s238_s1 }
   0xe   :  { %278 = vmatpush3.bf16.msra.mxu0 %v297_v4  ;;  %v175_v13 = vmul.f32 %v256_v11, %v256_v11  ;;  %v176_v14 = vmul.f32 %v257_v12, %v257_v12  ;;  %p321_p2 = scmp.lt.s32.totalorder %s319_s7, %s315_s2 }
   0xf   :  { %279 = vmatprep.subr.bf16.mxu0 %v337_v1  ;;  %v167_v18 = vmul.f32 %v260_v16, %v256_v11  ;;  %v168_v19 = vmul.f32 %v261_v17, %v257_v12 }
  0x10   :  { %177 = vadd.xlane.f32.xlu0 %v175_v13  ;;  %v136_v38 = vld [vmem:[#allocation2] sm:$0xff]  ;;  %p322_p3 = por %p321_p2, %p320_p1 }
  0x11   :  { %v137_v41 = vld [vmem:[#allocation2 + $0x8] sm:$0xff] }
  0x12   :  { %280 = vmatpush3.bf16.msra.mxu0 %v298_v5  ;;  %p323_p4 = pnand %p322_p3, %p316_p0 }
  0x13   :  { %281 = vmatprep.subr.bf16.mxu0 %v337_v1 }
  0x14   :  { %179 = vadd.xlane.f32.xlu0 %v176_v14 }
  0x16   :  { %282 = vmatpush3.bf16.msra.mxu0 %v299_v6 }
  0x17   :  { %283 = vmatprep.subr.bf16.mxu0 %v337_v1 }
  0x18   :  { %169 = vadd.xlane.f32.xlu0 %v167_v18 }
  0x1a   :  { %284 = vmatpush3.bf16.msra.mxu0 %v300_v7 }
  0x1b   :  { %285 = vmatprep.subr.bf16.mxu0 %v337_v1 }
  0x1e   :  { %286 = vmatpush3.bf16.msra.mxu0 %v301_v8 }
  0x21   :  { %288 = vmatmul.mubr.bf16.vlgmr.msra.gmra.mxu0 %v302_v9 }
  0x99   :  { %v178_v32 = vpop.xlane.xlu0 %177 }
  0x9a   :  { %v181_v33 = vmul.f32 2.0, %v178_v32 }
  0x9c   :  { %v183_v35 = vmul.f32 1.442695, %v181_v33 }
  0x9d   :  { %v180_v34 = vpop.xlane.xlu0 %179 }
  0x9e   :  { %v182_v36 = vmul.f32 2.0, %v180_v34 }
  0xa0   :  { %v185_v37 = vmul.f32 1.442695, %v182_v36 }
  0xa1   :  { %v170_v50 = vpop.xlane.xlu0 %169 }
  0xa2   :  { %v173_v51 = vmul.f32 2.0, %v170_v50 }
  0xe1   :  { %v129_v20 = vpop.f32.mrf.mxu0 }
  0xe2   :  { %v138_v21 = vmul.f32 2.0, %v129_v20 }
  0xe3   :  { %v289_v22 = vpop.f32.mrf.mxu0 }
  0xe4   :  { %v140_v23 = vmul.f32 1.442695, %v138_v21 }
  0xe5   :  { %v132_v24 = vpop.f32.mrf.mxu0 }
  0xe6   :  { %303 = vpow2.f32 %v140_v23  ;;  %v139_v25 = vmul.f32 2.0, %v132_v24 }
  0xe7   :  { %v290_v26 = vpop.f32.mrf.mxu0 }
  0xe8   :  { %v142_v27 = vmul.f32 1.442695, %v139_v25 }
  0xea   :  { %305 = vpow2.f32 %v142_v27 }
  0xeb   :  { %307 = vpow2.f32 %v183_v35 }
  0xec   :  { %309 = vpow2.f32 %v185_v37 }
  0xf3   :  { %v304_v28 = vpop.eup %303 }
  0xf4   :  { %v145_v29 = vsel %vm144_vm1, %v304_v28, 0.0 }
  0xf5   :  { %146 = vadd.xlane.f32.xlu1 %v145_v29 }
  0xf7   :  { %v306_v30 = vpop.eup %305 }
  0xf8   :  { %v148_v31 = vsel %vm144_vm1, %v306_v30, 0.0  ;;  %v308_v44 = vpop.eup %307 }
  0xf9   :  { %149 = vadd.xlane.f32.xlu1 %v148_v31  ;;  %v310_v47 = vpop.eup %309 }
  0xfd   :  { %171 = vadd.xlane.f32.xlu1 %v168_v19 }
 0x17e   :  { %v147_v39 = vpop.xlane.xlu1 %146 }
 0x17f   :  { %v151_v40 = vadd.f32 %v147_v39, %v136_v38 }
 0x181   :  { %154 = vst.msk [vmem:[#allocation2] sm:$0xff] %vm20_vm2, %v151_v40 }
 0x182   :  { %v150_v42 = vpop.xlane.xlu1 %149 }
 0x183   :  { %v152_v43 = vadd.f32 %v150_v42, %v137_v41 }
 0x185   :  { %155 = vst.msk [vmem:[#allocation2 + $0x8] sm:$0xff] %vm20_vm2, %v152_v43 }
 0x186   :  { %v172_v53 = vpop.xlane.xlu1 %171 }
 0x187   :  { %v174_v55 = vmul.f32 2.0, %v172_v53 }
 0x188   :  { %v187_v45 = vld [vmem:[#allocation2] sm:$0xff] }
 0x189   :  { %v189_v46 = vsub.f32 %v187_v45, %v308_v44 }
 0x18b   :  { %311 = vlog2.f32 %v189_v46 }
 0x18c   :  { %v188_v48 = vld [vmem:[#allocation2 + $0x8] sm:$0xff] }
 0x18d   :  { %v190_v49 = vsub.f32 %v188_v48, %v310_v47 }
 0x18f   :  { %313 = vlog2.f32 %v190_v49 }
 0x198   :  { %v312_v52 = vpop.eup %311 }
 0x199   :  { %v192_v54 = vmul.f32 0.6931472, %v312_v52 }
 0x19b   :  { %v195_v56 = vsub.f32 %v192_v54, %v173_v51 }
 0x19c   :  { %v314_v57 = vpop.eup %313 }
 0x19d   :  { %v194_v58 = vmul.f32 0.6931472, %v314_v57  ;;  %197 = vxpose.xlu0.b32.start [1/2] (short) (narrow) %v195_v56, 8 }
 0x19f   :  { %v196_v59 = vsub.f32 %v194_v58, %v174_v55 }
 0x1a1   :  { %198 = vxpose.xlu0.b32.end [2/2] (short) (narrow) %v196_v59, 8 }
 0x219   :  { %v213_v60 = vpop.trf.xlu0 }
 0x21a   :  { %230 = vst.msk [vmem:[#allocation3] sm:$0x1] %vm229_vm3, %v213_v60 }
 0x21b   :  { %326 = shalt.err (!%p323_p4)
}
 0x21c   :  { %240 = dma.vmem_to_hbm [thread:$0]  %s238_s1, 16, %s403_s3, [#allocation4]  }
 0x21d   :  { %335 = dma.done.wait [#allocation4], 16  }
 0x21e   :  { %336 = vsyncadd [#allocation4], 4294967280 }
 0x21f   :  { %244 = vsyncpa [#allocation4], 1 }

// kernel: tpu_custom_call.1
= control target key start
LH: loop header
LB: loop body
LE: loop exit
PB: predicated region body
PF: predicated region fallthrough
CT: control target
= control target key end

     0   :  { %v337_v1 = vmov 0.0   ;;  %vm338_vm0 = vmmov 0   ;;  %s400_s0 = inlined_call_operand.vmem [shape: bf16[128,16], index: 0, kind: input, shape index: {}]   ;;  %s401_s1 = inlined_call_operand.vmem [shape: bf16[16,128], index: 1, kind: input, shape index: {}]   ;;  %s402_s2 = inlined_call_operand.vmem [shape: bf16[16,128], index: 2, kind: input, shape index: {}]   ;;  %s403_s3 = inlined_call_operand.hbm [shape: f32[1,16], index: 3, kind: output, shape index: {}]  }
   0x1   :  { %v294_v0 = vld [vmem:[%s400_s0 + $0x38] sm:$0xff]   ;;  %271 = vmatprep.subr.bf16.mxu0 %v337_v1  ;;  %v295_v2 = vld [vmem:[%s400_s0 + $0x30] sm:$0xff]   ;;  %287 = vmatprep.mubr.msk.bf16.mxu0 %vm338_vm0, %v337_v1  ;;  %v296_v3 = vld [vmem:[%s400_s0 + $0x28] sm:$0xff]  }
   0x2   :  { %272 = vmatpush3.bf16.msra.mxu0 %v294_v0 }
   0x3   :  { %273 = vmatprep.subr.bf16.mxu0 %v337_v1 }
   0x6   :  { %274 = vmatpush3.bf16.msra.mxu0 %v295_v2 }
   0x7   :  { %275 = vmatprep.subr.bf16.mxu0 %v337_v1 }
   0x8   :  { %8 = vsyncpa [#allocation4], 0  ;;  %v297_v4 = vld [vmem:[%s400_s0 + $0x20] sm:$0xff]   ;;  %v298_v5 = vld [vmem:[%s400_s0 + $0x18] sm:$0xff]   ;;  %vm144_vm1 = vcmask 130048   ;;  %vm20_vm2 = vcmask 7168  }
   0x9   :  { %v299_v6 = vld [vmem:[%s400_s0 + $0x10] sm:$0xff]   ;;  %v300_v7 = vld [vmem:[%s400_s0 + $0x8] sm:$0xff]   ;;  %v301_v8 = vld [vmem:[%s400_s0] sm:$0xff]   ;;  %21 = vst.msk [vmem:[#allocation2] sm:$0xff] %vm20_vm2, %v337_v1  ;;  %s339_s0 = smov [#allocation3]   ;;  %vm229_vm3 = vcmask 122880  }
   0xa   :  { %276 = vmatpush3.bf16.msra.mxu0 %v296_v3  ;;  %v302_v9 = vld [vmem:[%s401_s1] sm:$0xff]   ;;  %22 = vst.msk [vmem:[#allocation2 + $0x8] sm:$0xff] %vm20_vm2, %v337_v1 }
   0xb   :  { %277 = vmatprep.subr.bf16.mxu0 %v337_v1  ;;  %v255_v10 = vld [vmem:[%s401_s1] sm:$0xff]   ;;  %s237_s1 = sshll.u32 %s339_s0, 4  ;;  %s238_s1 = int_to_ptr.vmem [resolvable:$true] %s237_s1 }
   0xc   :  { %v256_v11 = vunpack.c.l.bf16 %v255_v10  ;;  %v257_v12 = vunpack.c.h.bf16 %v255_v10  ;;  %v259_v15 = vld [vmem:[%s402_s2] sm:$0xff]   ;;  %s315_s2 = scalar_lea.vmem %s238_s1, 16  ;;  %s319_s7 = scalar_lea.vmem %s238_s1, 32 }
   0xd   :  { %v260_v16 = vunpack.c.l.bf16 %v259_v15  ;;  %v261_v17 = vunpack.c.h.bf16 %v259_v15  ;;  %p316_p0 = scmp.ne.s32.totalorder %s238_s1, %s315_s2  ;;  %p320_p1 = scmp.lt.s32.totalorder %s238_s1, %s238_s1 }
   0xe   :  { %278 = vmatpush3.bf16.msra.mxu0 %v297_v4  ;;  %v175_v13 = vmul.f32 %v256_v11, %v256_v11  ;;  %v176_v14 = vmul.f32 %v257_v12, %v257_v12  ;;  %p321_p2 = scmp.lt.s32.totalorder %s319_s7, %s315_s2 }
   0xf   :  { %279 = vmatprep.subr.bf16.mxu0 %v337_v1  ;;  %v167_v18 = vmul.f32 %v260_v16, %v256_v11  ;;  %v168_v19 = vmul.f32 %v261_v17, %v257_v12 }
  0x10   :  { %177 = vadd.xlane.f32.xlu0 %v175_v13  ;;  %v136_v38 = vld [vmem:[#allocation2] sm:$0xff]  ;;  %p322_p3 = por %p321_p2, %p320_p1 }
  0x11   :  { %v137_v41 = vld [vmem:[#allocation2 + $0x8] sm:$0xff] }
  0x12   :  { %280 = vmatpush3.bf16.msra.mxu0 %v298_v5  ;;  %p323_p4 = pnand %p322_p3, %p316_p0 }
  0x13   :  { %281 = vmatprep.subr.bf16.mxu0 %v337_v1 }
  0x14   :  { %179 = vadd.xlane.f32.xlu0 %v176_v14 }
  0x16   :  { %282 = vmatpush3.bf16.msra.mxu0 %v299_v6 }
  0x17   :  { %283 = vmatprep.subr.bf16.mxu0 %v337_v1 }
  0x18   :  { %169 = vadd.xlane.f32.xlu0 %v167_v18 }
  0x1a   :  { %284 = vmatpush3.bf16.msra.mxu0 %v300_v7 }
  0x1b   :  { %285 = vmatprep.subr.bf16.mxu0 %v337_v1 }
  0x1e   :  { %286 = vmatpush3.bf16.msra.mxu0 %v301_v8 }
  0x21   :  { %288 = vmatmul.mubr.bf16.vlgmr.msra.gmra.mxu0 %v302_v9 }
  0x99   :  { %v178_v32 = vpop.xlane.xlu0 %177 }
  0x9a   :  { %v181_v33 = vmul.f32 2.0, %v178_v32 }
  0x9c   :  { %v183_v35 = vmul.f32 1.442695, %v181_v33 }
  0x9d   :  { %v180_v34 = vpop.xlane.xlu0 %179 }
  0x9e   :  { %v182_v36 = vmul.f32 2.0, %v180_v34 }
  0xa0   :  { %v185_v37 = vmul.f32 1.442695, %v182_v36 }
  0xa1   :  { %v170_v50 = vpop.xlane.xlu0 %169 }
  0xa2   :  { %v173_v51 = vmul.f32 2.0, %v170_v50 }
  0xe1   :  { %v129_v20 = vpop.f32.mrf.mxu0 }
  0xe2   :  { %v138_v21 = vmul.f32 2.0, %v129_v20 }
  0xe3   :  { %v289_v22 = vpop.f32.mrf.mxu0 }
  0xe4   :  { %v140_v23 = vmul.f32 1.442695, %v138_v21 }
  0xe5   :  { %v132_v24 = vpop.f32.mrf.mxu0 }
  0xe6   :  { %303 = vpow2.f32 %v140_v23  ;;  %v139_v25 = vmul.f32 2.0, %v132_v24 }
  0xe7   :  { %v290_v26 = vpop.f32.mrf.mxu0 }
  0xe8   :  { %v142_v27 = vmul.f32 1.442695, %v139_v25 }
  0xea   :  { %305 = vpow2.f32 %v142_v27 }
  0xeb   :  { %307 = vpow2.f32 %v183_v35 }
  0xec   :  { %309 = vpow2.f32 %v185_v37 }
  0xf3   :  { %v304_v28 = vpop.eup %303 }
  0xf4   :  { %v145_v29 = vsel %vm144_vm1, %v304_v28, 0.0 }
  0xf5   :  { %146 = vadd.xlane.f32.xlu1 %v145_v29 }
  0xf7   :  { %v306_v30 = vpop.eup %305 }
  0xf8   :  { %v148_v31 = vsel %vm144_vm1, %v306_v30, 0.0  ;;  %v308_v44 = vpop.eup %307 }
  0xf9   :  { %149 = vadd.xlane.f32.xlu1 %v148_v31  ;;  %v310_v47 = vpop.eup %309 }
  0xfd   :  { %171 = vadd.xlane.f32.xlu1 %v168_v19 }
 0x17e   :  { %v147_v39 = vpop.xlane.xlu1 %146 }
 0x17f   :  { %v151_v40 = vadd.f32 %v147_v39, %v136_v38 }
 0x181   :  { %154 = vst.msk [vmem:[#allocation2] sm:$0xff] %vm20_vm2, %v151_v40 }
 0x182   :  { %v150_v42 = vpop.xlane.xlu1 %149 }
 0x183   :  { %v152_v43 = vadd.f32 %v150_v42, %v137_v41 }
 0x185   :  { %155 = vst.msk [vmem:[#allocation2 + $0x8] sm:$0xff] %vm20_vm2, %v152_v43 }
 0x186   :  { %v172_v53 = vpop.xlane.xlu1 %171 }
 0x187   :  { %v174_v55 = vmul.f32 2.0, %v172_v53 }
 0x188   :  { %v187_v45 = vld [vmem:[#allocation2] sm:$0xff] }
 0x189   :  { %v189_v46 = vsub.f32 %v187_v45, %v308_v44 }
 0x18b   :  { %311 = vlog2.f32 %v189_v46 }
 0x18c   :  { %v188_v48 = vld [vmem:[#allocation2 + $0x8] sm:$0xff] }
 0x18d   :  { %v190_v49 = vsub.f32 %v188_v48, %v310_v47 }
 0x18f   :  { %313 = vlog2.f32 %v190_v49 }
 0x198   :  { %v312_v52 = vpop.eup %311 }
 0x199   :  { %v192_v54 = vmul.f32 0.6931472, %v312_v52 }
 0x19b   :  { %v195_v56 = vsub.f32 %v192_v54, %v173_v51 }
 0x19c   :  { %v314_v57 = vpop.eup %313 }
 0x19d   :  { %v194_v58 = vmul.f32 0.6931472, %v314_v57  ;;  %197 = vxpose.xlu0.b32.start [1/2] (short) (narrow) %v195_v56, 8 }
 0x19f   :  { %v196_v59 = vsub.f32 %v194_v58, %v174_v55 }
 0x1a1   :  { %198 = vxpose.xlu0.b32.end [2/2] (short) (narrow) %v196_v59, 8 }
 0x219   :  { %v213_v60 = vpop.trf.xlu0 }
 0x21a   :  { %230 = vst.msk [vmem:[#allocation3] sm:$0x1] %vm229_vm3, %v213_v60 }
 0x21b   :  { %326 = shalt.err (!%p323_p4)
}
 0x21c   :  { %240 = dma.vmem_to_hbm [thread:$0]  %s238_s1, 16, %s403_s3, [#allocation4]  }
 0x21d   :  { %335 = dma.done.wait [#allocation4], 16  }
 0x21e   :  { %336 = vsyncadd [#allocation4], 4294967280 }
 0x21f   :  { %244 = vsyncpa [#allocation4], 1 }

</bundles_post_ra>
